<compile_context>
chip_gen: v5e
topology: v5e:2x2
jax: 0.10.0
libtpu: 0.0.40
codegen_flags: <defaults>
</compile_context>

<pallas_src>
import functools

import jax
import jax.numpy as jnp
from jax.experimental import pallas as pl
from jax.experimental.pallas import tpu as pltpu

H1, H2, H3 = 256, 256, 128
CTRL_PAD = 128            # pad control_dim up to a lane multiple -> unmasked stores

# ---- packed parameter slab layout (bf16, 256 lanes wide) -------------------------
SLAB_COLS = 256
R_W1O = 0        # 16 rows reserved; first d_odom  rows used, all 256 lanes
R_W1L = 16       # 32 rows reserved; first d_laser rows used, all 256 lanes
R_W2 = 48        # 256 rows, all 256 lanes
R_W3 = 304       # 256 rows, lanes   0:128
R_W4 = 304       # 128 rows, lanes 128:256 (shares rows with w3)
R_B = 560        # 4 rows of biases (b1,b2,b3,b4), bf16
SLAB_ROWS = 576  # rounded up to a multiple of 16


def _round_up(x, m):
    return ((x + m - 1) // m) * m


def _mlp_kernel(d_odom, d_laser, odom_ref, laser_ref, slab_ref, o_ref):
    bf16 = jnp.bfloat16
    f32 = jnp.float32

    # Static slices of the resident parameter slab (all segment starts 16-row aligned).
    w1o = slab_ref[R_W1O:R_W1O + d_odom, :]          # (d_odom, 256)
    w1l = slab_ref[R_W1L:R_W1L + d_laser, :]         # (d_laser, 256)
    w2 = slab_ref[R_W2:R_W2 + H1, :]                 # (256, 256)
    w3 = slab_ref[R_W3:R_W3 + H2, 0:H3]              # (256, 128)
    w4 = slab_ref[R_W4:R_W4 + H3, H3:H3 + CTRL_PAD]  # (128, 128)
    b = slab_ref[R_B:R_B + 4, :]                     # (4, 256) bf16
    b1 = b[0:1, :]                                   # (1, 256)
    b2 = b[1:2, :]                                   # (1, 256)
    b3 = b[2:3, :H3]                                 # (1, 128)
    b4 = b[3:4, :CTRL_PAD]                           # (1, 128)

    # Layer 1 — fused concat: [odom | laser] @ W1 as two MXU dots into one f32 acc.
    h = jnp.dot(odom_ref[...].astype(bf16), w1o, preferred_element_type=f32)
    h = h + jnp.dot(laser_ref[...].astype(bf16), w1l, preferred_element_type=f32)
    h = jnp.maximum(h.astype(bf16) + b1, 0)          # (TB, 256) bf16 elementwise

    h = jnp.dot(h, w2, preferred_element_type=f32)
    h = jnp.maximum(h.astype(bf16) + b2, 0)          # (TB, 256)

    h = jnp.dot(h, w3, preferred_element_type=f32)
    h = jnp.maximum(h.astype(bf16) + b3, 0)          # (TB, 128)

    h = jnp.dot(h, w4, preferred_element_type=f32)
    o_ref[...] = (h.astype(bf16) + b4).astype(o_ref.dtype)   # (TB, 128 padded) bf16


@functools.partial(jax.jit, static_argnames=("control_dim", "tile_b_max", "min_grid"))
def pose_to_control_pallas(odom_input, laser_scan, packed, *, control_dim,
                           tile_b_max=512, min_grid=1):
    """Forward pass of PoseToControl.

    odom_input: (B, d_odom) f32
    laser_scan: (B, d_laser) f32, with d_odom + d_laser == 31
    packed:     dict from pack_params() (single bf16 parameter slab)
    min_grid:   set to 2 on v7x so the "parallel" batch axis shards across both TCs.
    """
    B, d_odom = odom_input.shape
    d_laser = laser_scan.shape[1]

    # Balanced batch tiling: split B into the fewest <= tile_b_max tiles of ~equal
    # size, each a multiple of 8 sublanes (avoids mostly-padding trailing tiles).
    num_tiles = max(min_grid, -(-B // tile_b_max))
    tile_b = min(tile_b_max, _round_up(-(-B // num_tiles), 8))
    grid_b = -(-B // tile_b)
    B_pad = tile_b * grid_b
    if B_pad != B:
        odom_input = jnp.pad(odom_input, ((0, B_pad - B), (0, 0)))
        laser_scan = jnp.pad(laser_scan, ((0, B_pad - B), (0, 0)))

    slab = packed["slab"]

    flops = 2 * B_pad * (d_odom * H1 + d_laser * H1 + H1 * H2 + H2 * H3 + H3 * CTRL_PAD)
    bytes_accessed = (int(slab.size) * slab.dtype.itemsize
                      + int(odom_input.size) * 4 + int(laser_scan.size) * 4
                      + B_pad * CTRL_PAD * 2)

    kernel = functools.partial(_mlp_kernel, d_odom, d_laser)

    out = pl.pallas_call(
        kernel,
        out_shape=jax.ShapeDtypeStruct((B_pad, CTRL_PAD), jnp.bfloat16),
        grid_spec=pltpu.PrefetchScalarGridSpec(
            num_scalar_prefetch=0,
            grid=(grid_b,),
            in_specs=[
                pl.BlockSpec((tile_b, d_odom), lambda i: (i, 0)),
                pl.BlockSpec((tile_b, d_laser), lambda i: (i, 0)),
                # Single parameter slab: constant index_map -> fetched once, resident
                # in VMEM across all batch tiles (one DMA per call).
                pl.BlockSpec((SLAB_ROWS, SLAB_COLS), lambda i: (0, 0)),
            ],
            out_specs=pl.BlockSpec((tile_b, CTRL_PAD), lambda i: (i, 0)),
        ),
        compiler_params=pltpu.CompilerParams(dimension_semantics=("parallel",)),
        cost_estimate=pl.CostEstimate(flops=flops, transcendentals=0,
                                      bytes_accessed=bytes_accessed),
    )(odom_input, laser_scan, slab)

    return out[:B, :control_dim].astype(jnp.float32)


def init_params(control_dim, key):
    """Deterministic synthetic f32 parameters matching the module's shapes ((in,out) layout)."""
    dims = [(31, H1), (H1, H2), (H2, H3), (H3, control_dim)]
    params = {}
    for i, (din, dout) in enumerate(dims, start=1):
        key, kw, kb = jax.random.split(key, 3)
        scale = 1.0 / jnp.sqrt(jnp.float32(din))
        params[f"w{i}"] = (jax.random.uniform(kw, (din, dout), jnp.float32,
                                              minval=-1.0, maxval=1.0) * scale)
        params[f"b{i}"] = (jax.random.uniform(kb, (1, dout), jnp.float32,
                                              minval=-1.0, maxval=1.0) * scale)
    return params


def pack_params(params_f32, d_odom, control_dim):
    """One-time repack into a single bf16 slab: w1 split at the concat boundary,
    w4 padded into lanes 128:256 alongside w3, biases in the last 4 used rows."""
    d_laser = 31 - d_odom
    assert params_f32["w1"].shape == (31, H1)
    assert params_f32["w3"].shape == (H2, H3) and H3 == 128, "slab layout assumes H3 == 128"
    assert params_f32["w4"].shape == (H3, control_dim)
    assert control_dim <= CTRL_PAD, "control_dim must be <= 128 for this packing"
    assert d_odom <= 16 and d_laser <= 32, "slab layout reserves 16/32 rows for w1 halves"

    bf16 = jnp.bfloat16
    w1 = params_f32["w1"]

    slab = jnp.zeros((SLAB_ROWS, SLAB_COLS), bf16)
    slab = slab.at[R_W1O:R_W1O + d_odom, :H1].set(w1[:d_odom].astype(bf16))
    slab = slab.at[R_W1L:R_W1L + d_laser, :H1].set(w1[d_odom:].astype(bf16))
    slab = slab.at[R_W2:R_W2 + H1, :H2].set(params_f32["w2"].astype(bf16))
    slab = slab.at[R_W3:R_W3 + H2, :H3].set(params_f32["w3"].astype(bf16))
    slab = slab.at[R_W4:R_W4 + H3, H3:H3 + control_dim].set(params_f32["w4"].astype(bf16))
    slab = slab.at[R_B + 0, :H1].set(params_f32["b1"][0].astype(bf16))
    slab = slab.at[R_B + 1, :H2].set(params_f32["b2"][0].astype(bf16))
    slab = slab.at[R_B + 2, :H3].set(params_f32["b3"][0].astype(bf16))
    slab = slab.at[R_B + 3, :control_dim].set(params_f32["b4"][0].astype(bf16))
    return {"slab": slab}


def reference_forward(odom, laser, params_f32, d_odom, control_dim):
    """JAX reference with the same numerics as the kernel (bf16 weights/biases,
    f32 MXU accumulation, bf16 bias-add/ReLU)."""
    bf16, f32 = jnp.bfloat16, jnp.float32
    w1 = params_f32["w1"]

    h = (jnp.dot(odom.astype(bf16), w1[:d_odom].astype(bf16), preferred_element_type=f32)
         + jnp.dot(laser.astype(bf16), w1[d_odom:].astype(bf16), preferred_element_type=f32))
    h = jnp.maximum(h.astype(bf16) + params_f32["b1"].astype(bf16), 0)

    h = jnp.dot(h, params_f32["w2"].astype(bf16), preferred_element_type=f32)
    h = jnp.maximum(h.astype(bf16) + params_f32["b2"].astype(bf16), 0)

    h = jnp.dot(h, params_f32["w3"].astype(bf16), preferred_element_type=f32)
    h = jnp.maximum(h.astype(bf16) + params_f32["b3"].astype(bf16), 0)

    h = jnp.dot(h, params_f32["w4"].astype(bf16), preferred_element_type=f32)
    h = h.astype(bf16) + params_f32["b4"].astype(bf16)
    return h[:, :control_dim].astype(f32)


if __name__ == "__main__":
    key = jax.random.PRNGKey(0)
    k_params, k_odom, k_laser = jax.random.split(key, 3)

    control_dim = 2
    batch = 8
    d_odom, d_laser = 6, 25          # 6 + 25 = 31 total input features

    params = init_params(control_dim, k_params)
    packed = pack_params(params, d_odom, control_dim)

    odom_input = jax.random.normal(k_odom, (batch, d_odom), jnp.float32)
    laser_scan = jax.random.normal(k_laser, (batch, d_laser), jnp.float32)

    out = pose_to_control_pallas(odom_input, laser_scan, packed, control_dim=control_dim)
    out = jax.block_until_ready(out)

    ref = reference_forward(odom_input, laser_scan, params, d_odom, control_dim)
    assert out.shape == (batch, control_dim)
    assert jnp.allclose(out, ref, atol=2e-2, rtol=2e-2), "mismatch vs JAX reference"

    print("KERNEL_OK")
</pallas_src>

<mosaic_0001>
module attributes {stable_mosaic.version = 11 : i64} {
  func.func @_mlp_kernel(%arg0: i32, %arg1: memref<8x6xf32, #tpu.memory_space<vmem>>, %arg2: memref<8x25xf32, #tpu.memory_space<vmem>>, %arg3: memref<576x256xbf16, #tpu.memory_space<vmem>>, %arg4: memref<8x128xbf16, #tpu.memory_space<vmem>>) attributes {dimension_semantics = [#tpu.dimension_semantics<parallel>], iteration_bounds = array<i64: 1>, scalar_prefetch = 0 : i64, scratch_operands = 0 : i64, tpu.core_type = #tpu.core_type<tc>, window_params = [{transform_indices = @transform_0, window_bounds = array<i64: 8, 6>}, {transform_indices = @transform_1, window_bounds = array<i64: 8, 25>}, {pipeline_mode = #tpu.pipeline_mode<synchronous>, transform_indices = @transform_2, window_bounds = array<i64: 576, 256>}, {transform_indices = @transform_3, window_bounds = array<i64: 8, 128>}]} {
    %c0 = arith.constant 0 : index
    %c0_0 = arith.constant 0 : index
    %0 = vector.load %arg3[%c0, %c0_0] : memref<576x256xbf16, #tpu.memory_space<vmem>>, vector<6x256xbf16>
    %c16 = arith.constant 16 : index
    %c0_1 = arith.constant 0 : index
    %1 = vector.load %arg3[%c16, %c0_1] : memref<576x256xbf16, #tpu.memory_space<vmem>>, vector<25x256xbf16>
    %c48 = arith.constant 48 : index
    %c0_2 = arith.constant 0 : index
    %2 = vector.load %arg3[%c48, %c0_2] : memref<576x256xbf16, #tpu.memory_space<vmem>>, vector<256x256xbf16>
    %c304 = arith.constant 304 : index
    %c0_3 = arith.constant 0 : index
    %3 = vector.load %arg3[%c304, %c0_3] : memref<576x256xbf16, #tpu.memory_space<vmem>>, vector<256x128xbf16>
    %c304_4 = arith.constant 304 : index
    %c128 = arith.constant 128 : index
    %4 = vector.load %arg3[%c304_4, %c128] : memref<576x256xbf16, #tpu.memory_space<vmem>>, vector<128x128xbf16>
    %c560 = arith.constant 560 : index
    %c0_5 = arith.constant 0 : index
    %5 = vector.load %arg3[%c560, %c0_5] : memref<576x256xbf16, #tpu.memory_space<vmem>>, vector<4x256xbf16>
    %6 = vector.extract_strided_slice %5 {offsets = [0, 0], sizes = [1, 256], strides = [1, 1]} : vector<4x256xbf16> to vector<1x256xbf16>
    %7 = vector.extract_strided_slice %5 {offsets = [1, 0], sizes = [1, 256], strides = [1, 1]} : vector<4x256xbf16> to vector<1x256xbf16>
    %8 = vector.extract_strided_slice %5 {offsets = [2, 0], sizes = [1, 128], strides = [1, 1]} : vector<4x256xbf16> to vector<1x128xbf16>
    %9 = vector.extract_strided_slice %5 {offsets = [3, 0], sizes = [1, 128], strides = [1, 1]} : vector<4x256xbf16> to vector<1x128xbf16>
    %c0_6 = arith.constant 0 : index
    %c0_7 = arith.constant 0 : index
    %10 = vector.load %arg1[%c0_6, %c0_7] : memref<8x6xf32, #tpu.memory_space<vmem>>, vector<8x6xf32>
    %11 = arith.truncf %10 : vector<8x6xf32> to vector<8x6xbf16>
    %cst = arith.constant dense<0.000000e+00> : vector<8x256xf32>
    %12 = tpu.matmul %11, %0, %cst {dimension_numbers = #tpu.dot_dimension_numbers<[1], [0], [0], [1], [0, 0, 1, 1], [], []>} : vector<8x6xbf16>, vector<6x256xbf16>, vector<8x256xf32> -> vector<8x256xf32>
    %c0_8 = arith.constant 0 : index
    %c0_9 = arith.constant 0 : index
    %13 = vector.load %arg2[%c0_8, %c0_9] : memref<8x25xf32, #tpu.memory_space<vmem>>, vector<8x25xf32>
    %14 = arith.truncf %13 : vector<8x25xf32> to vector<8x25xbf16>
    %cst_10 = arith.constant dense<0.000000e+00> : vector<8x256xf32>
    %15 = tpu.matmul %14, %1, %cst_10 {dimension_numbers = #tpu.dot_dimension_numbers<[1], [0], [0], [1], [0, 0, 1, 1], [], []>} : vector<8x25xbf16>, vector<25x256xbf16>, vector<8x256xf32> -> vector<8x256xf32>
    %16 = arith.addf %12, %15 : vector<8x256xf32>
    %17 = arith.truncf %16 : vector<8x256xf32> to vector<8x256xbf16>
    %18 = vector.broadcast %6 : vector<1x256xbf16> to vector<8x256xbf16>
    %19 = arith.addf %17, %18 : vector<8x256xbf16>
    %cst_11 = arith.constant 0.000000e+00 : bf16
    %20 = vector.broadcast %cst_11 : bf16 to vector<8x256xbf16>
    %21 = arith.maximumf %19, %20 : vector<8x256xbf16>
    %cst_12 = arith.constant dense<0.000000e+00> : vector<8x256xf32>
    %22 = tpu.matmul %21, %2, %cst_12 {dimension_numbers = #tpu.dot_dimension_numbers<[1], [0], [0], [1], [0, 0, 1, 1], [], []>} : vector<8x256xbf16>, vector<256x256xbf16>, vector<8x256xf32> -> vector<8x256xf32>
    %23 = arith.truncf %22 : vector<8x256xf32> to vector<8x256xbf16>
    %24 = vector.broadcast %7 : vector<1x256xbf16> to vector<8x256xbf16>
    %25 = arith.addf %23, %24 : vector<8x256xbf16>
    %cst_13 = arith.constant 0.000000e+00 : bf16
    %26 = vector.broadcast %cst_13 : bf16 to vector<8x256xbf16>
    %27 = arith.maximumf %25, %26 : vector<8x256xbf16>
    %cst_14 = arith.constant dense<0.000000e+00> : vector<8x128xf32>
    %28 = tpu.matmul %27, %3, %cst_14 {dimension_numbers = #tpu.dot_dimension_numbers<[1], [0], [0], [1], [0, 0, 1, 1], [], []>} : vector<8x256xbf16>, vector<256x128xbf16>, vector<8x128xf32> -> vector<8x128xf32>
    %29 = arith.truncf %28 : vector<8x128xf32> to vector<8x128xbf16>
    %30 = vector.broadcast %8 : vector<1x128xbf16> to vector<8x128xbf16>
    %31 = arith.addf %29, %30 : vector<8x128xbf16>
    %cst_15 = arith.constant 0.000000e+00 : bf16
    %32 = vector.broadcast %cst_15 : bf16 to vector<8x128xbf16>
    %33 = arith.maximumf %31, %32 : vector<8x128xbf16>
    %cst_16 = arith.constant dense<0.000000e+00> : vector<8x128xf32>
    %34 = tpu.matmul %33, %4, %cst_16 {dimension_numbers = #tpu.dot_dimension_numbers<[1], [0], [0], [1], [0, 0, 1, 1], [], []>} : vector<8x128xbf16>, vector<128x128xbf16>, vector<8x128xf32> -> vector<8x128xf32>
    %35 = arith.truncf %34 : vector<8x128xf32> to vector<8x128xbf16>
    %36 = vector.broadcast %9 : vector<1x128xbf16> to vector<8x128xbf16>
    %37 = arith.addf %35, %36 : vector<8x128xbf16>
    %c0_17 = arith.constant 0 : index
    %c0_18 = arith.constant 0 : index
    %38 = vector.load %arg4[%c0_17, %c0_18] : memref<8x128xbf16, #tpu.memory_space<vmem>>, vector<8x128xbf16>
    tpu.vector_store %arg4[%c0_17, %c0_18], %37 {strides = array<i32>} : memref<8x128xbf16, #tpu.memory_space<vmem>>, vector<8x128xbf16>,
    return
  }
  func.func @transform_0(%arg0: i32) -> (i32, i32) {
    %c0_i32 = arith.constant 0 : i32
    %c0_i32_0 = arith.constant 0 : i32
    return %arg0, %c0_i32 : i32, i32
  }
  func.func @transform_1(%arg0: i32) -> (i32, i32) {
    %c0_i32 = arith.constant 0 : i32
    %c0_i32_0 = arith.constant 0 : i32
    return %arg0, %c0_i32 : i32, i32
  }
  func.func @transform_2(%arg0: i32) -> (i32, i32) {
    %c0_i32 = arith.constant 0 : i32
    %c0_i32_0 = arith.constant 0 : i32
    %c0_i32_1 = arith.constant 0 : i32
    return %c0_i32, %c0_i32_0 : i32, i32
  }
  func.func @transform_3(%arg0: i32) -> (i32, i32) {
    %c0_i32 = arith.constant 0 : i32
    %c0_i32_0 = arith.constant 0 : i32
    return %arg0, %c0_i32 : i32, i32
  }
}

</mosaic_0001>

<bundles_post_ra>
// kernel: pose_to_control_pallas.1
= control target key start
LH: loop header
LB: loop body
LE: loop exit
PB: predicated region body
PF: predicated region fallthrough
CT: control target
= control target key end

     0   :  { %8 = vsyncpa [#allocation3], 0  ;;  %s1165_s0 = inlined_call_operand.hbm [shape: f32[8,6], index: 0, kind: input, shape index: {}]   ;;  %s1166_s1 = inlined_call_operand.hbm [shape: f32[8,25], index: 1, kind: input, shape index: {}]   ;;  %s1167_s2 = inlined_call_operand.hbm [shape: bf16[576,256], index: 2, kind: input, shape index: {}]   ;;  %s1168_s3 = inlined_call_operand.vmem [shape: bf16[8,128], index: 3, kind: output, shape index: {}]  }
   0x1   :  { %9 = vsyncpa [#allocation5], 0  ;;  %s26_s14 = sshll.u32 %s1166_s1, 4  ;;  %s1106_s15 = smov [#allocation4]   ;;  %s27_s14 = int_to_ptr.hbm [resolvable:$true] %s26_s14 }
   0x2   :  { %s28_s16 = sshll.u32 %s1106_s15, 4  ;;  %s15_s19 = sshll.u32 %s1165_s0, 4  ;;  %s29_s16 = int_to_ptr.vmem [resolvable:$true] %s28_s16  ;;  %s16_s19 = int_to_ptr.hbm [resolvable:$true] %s15_s19 }
   0x3   :  { %31 = dma.hbm_to_vmem [thread:$0]  %s27_s14, 128, %s29_s16, [#allocation5]  }
   0x4   :  { %s1107_s20 = smov [#allocation2]   ;;  %s36_s24 = sshll.u32 %s1167_s2, 4  ;;  %s37_s24 = int_to_ptr.hbm [resolvable:$true] %s36_s24 }
   0x5   :  { %s17_s21 = sshll.u32 %s1107_s20, 4  ;;  %s1108_s1 = smov [#allocation6]   ;;  %s18_s21 = int_to_ptr.vmem [resolvable:$true] %s17_s21 }
   0x6   :  { %20 = dma.hbm_to_vmem [thread:$0]  %s16_s19, 128, %s18_s21, [#allocation3]  }
   0x7   :  { %s38_s25 = sshll.u32 %s1108_s1, 4  ;;  %s1109_s26 = smov 128   ;;  %s39_s25 = int_to_ptr.vmem [resolvable:$true] %s38_s25 }
   0x8   :  { %s1110_s27 = smov 8  }
   0x9   :  { %44 = dma.hbm_to_vmem [thread:$0]  %s37_s24, 9216, %s39_s25, [#allocation5], %s1109_s26, %s1109_s26, %s1110_s27  }
   0xa   :  { %1102 = dma.done.wait [#allocation3], 128  }
   0xb   :  { %1103 = vsyncadd [#allocation3], 4294967168 }
   0xc   :  { %1104 = dma.done.wait [#allocation5], 9344  }
   0xd   :  { %1105 = vsyncadd [#allocation5], 4294957952  ;;  %vm170_vm0 = vcmask 1043456   ;;  %vm171_vm1 = vcmask 1044480   ;;  %v1111_v0 = vmov 65535   ;;  %v144_v10 = vld [vmem:[#allocation2] sm:$0xff] }
   0xe   :  { %v172_v1 = vsel %vm170_vm0, 4294967295, %v1111_v0  ;;  %v730_v3 = vld [vmem:[#allocation6 + $0x20] sm:$0xf]  ;;  %v967_v4 = vld [vmem:[#allocation6 + $0x24] sm:$0x10]  ;;  %vm215_vm2 = vcmask 1042432   ;;  %v145_v20 = vpack.c.bf16 %v144_v10, %v144_v10 }
   0xf   :  { %v173_v2 = vsel %vm171_vm1, %v172_v1, 0  ;;  %v58_v5 = vld [vmem:[#allocation6] sm:$0x77]  ;;  %v731_v6 = vor.u32 %v967_v4, %v730_v3  ;;  %v722_v8 = vld [vmem:[#allocation6 + $0x10] sm:$0xf]  ;;  %v146_v17 = vld [vmem:[#allocation4] sm:$0xff] }
  0x10   :  { %v207_v7 = vunpack.c.l.b16 %v58_v5  ;;  %v965_v9 = vld [vmem:[#allocation6 + $0x14] sm:$0xf0]  ;;  %v208_v11 = vunpack.c.h.b16 %v58_v5  ;;  %v966_v12 = vld [vmem:[#allocation6 + $0x24] sm:$0xf]  ;;  %v732_v13 = vld [vmem:[#allocation6 + $0x28] sm:$0x10]  ;;  %v147_v35 = vpack.c.bf16 %v146_v17, %v146_v17 }
  0x11   :  { %v175_v14 = vand.u32 %v731_v6, %v173_v2  ;;  %v798_v18 = vld [vmem:[#allocation6 + $0xa0] sm:$0xf]  ;;  %v723_v19 = vor.u32 %v965_v9, %v722_v8  ;;  %v735_v21 = vor.u32 %v966_v12, %v732_v13  ;;  %v983_v22 = vld [vmem:[#allocation6 + $0xa4] sm:$0xf0]  ;;  %v982_v29 = vld [vmem:[#allocation6 + $0xa4] sm:$0xf] }
  0x12   :  { %v209_v15 = vpack.c.b16 %v207_v7, %v207_v7  ;;  %v210_v16 = vpack.c.b16 %v208_v11, %v208_v11  ;;  %v862_v23 = vld [vmem:[#allocation6 + $0x120] sm:$0xf]  ;;  %v999_v24 = vld [vmem:[#allocation6 + $0x124] sm:$0xf0]  ;;  %v799_v27 = vor.u32 %v983_v22, %v798_v18  ;;  %v800_v30 = vld [vmem:[#allocation6 + $0xa8] sm:$0xf0] }
  0x13   :  { %186 = vmatpush.bf16.msra.mxu1 %v175_v14  ;;  %v863_v28 = vor.u32 %v999_v24, %v862_v23  ;;  %vm211_vm3 = vcmask 48128   ;;  %v178_v31 = vand.u32 %v735_v21, %v173_v2  ;;  %v803_v32 = vor.u32 %v982_v29, %v800_v30  ;;  %v964_v33 = vld [vmem:[#allocation6 + $0x14] sm:$0xf]  ;;  %v724_v34 = vld [vmem:[#allocation6 + $0x18] sm:$0xf0] }
  0x14   :  { %v217_v25 = vsel %vm215_vm2, %v209_v15, 0  ;;  %v220_v26 = vsel %vm215_vm2, %v210_v16, 0  ;;  %v998_v36 = vld [vmem:[#allocation6 + $0x124] sm:$0xf]  ;;  %v864_v37 = vld [vmem:[#allocation6 + $0x128] sm:$0xf0]  ;;  %v727_v38 = vor.u32 %v964_v33, %v724_v34 }
  0x15   :  { %229 = vmatpush.bf16.msra.mxu2 %v217_v25  ;;  %242 = vmatpush.bf16.msra.mxu3 %v220_v26  ;;  %vm166_vm4 = vcmask 203776   ;;  %v867_v39 = vor.u32 %v998_v36, %v864_v37  ;;  %v790_v40 = vld [vmem:[#allocation6 + $0x90] sm:$0xf]  ;;  %v981_v41 = vld [vmem:[#allocation6 + $0x94] sm:$0xf0] }
  0x16   :  { %461 = vmatpush.bf16.msra.mxu0 %v803_v32  ;;  %v854_v42 = vld [vmem:[#allocation6 + $0x110] sm:$0xf]  ;;  %v791_v43 = vor.u32 %v981_v41, %v790_v40  ;;  %v997_v44 = vld [vmem:[#allocation6 + $0x114] sm:$0xf0]  ;;  %v980_v45 = vld [vmem:[#allocation6 + $0x94] sm:$0xf] }
  0x17   :  { %187 = vmatpush.bf16.msra.mxu1 %v723_v19  ;;  %v792_v46 = vld [vmem:[#allocation6 + $0x98] sm:$0xf0]  ;;  %v855_v47 = vor.u32 %v997_v44, %v854_v42  ;;  %v996_v49 = vld [vmem:[#allocation6 + $0x114] sm:$0xf]  ;;  %v782_v52 = vld [vmem:[#allocation6 + $0x80] sm:$0xf] }
  0x18   :  { %738 = vmatmul.msk.bf16.vlgmr.msra.gmra.mxu2 %vm211_vm3, %v145_v20  ;;  %739 = vmatmul.msk.bf16.vlgmr.msra.gmra.mxu3 %vm211_vm3, %v145_v20  ;;  %v795_v48 = vor.u32 %v980_v45, %v792_v46  ;;  %v856_v50 = vld [vmem:[#allocation6 + $0x118] sm:$0xf0]  ;;  %v979_v53 = vld [vmem:[#allocation6 + $0x84] sm:$0xf0]  ;;  %v846_v54 = vld [vmem:[#allocation6 + $0x100] sm:$0xf] }
  0x19   :  { %435 = vmatpush.bf16.msrb.mxu2 %v799_v27  ;;  %448 = vmatpush.bf16.msrb.mxu3 %v863_v28  ;;  %v859_v51 = vor.u32 %v996_v49, %v856_v50  ;;  %v783_v55 = vor.u32 %v979_v53, %v782_v52  ;;  %v995_v56 = vld [vmem:[#allocation6 + $0x104] sm:$0xf0]  ;;  %v978_v57 = vld [vmem:[#allocation6 + $0x84] sm:$0xf]  ;;  %v784_v58 = vld [vmem:[#allocation6 + $0x88] sm:$0xf0] }
  0x1a   :  { %736 = vmatmul.msk.bf16.vlgmr.msra.gmra.mxu1 %vm166_vm4, %v147_v35  ;;  %462 = vmatpush.bf16.msra.mxu0 %v795_v48  ;;  %v847_v59 = vor.u32 %v995_v56, %v846_v54  ;;  %v787_v60 = vor.u32 %v978_v57, %v784_v58  ;;  %v994_v61 = vld [vmem:[#allocation6 + $0x104] sm:$0xf]  ;;  %v848_v62 = vld [vmem:[#allocation6 + $0x108] sm:$0xf0]  ;;  %v774_v0 = vld [vmem:[#allocation6 + $0x70] sm:$0xf] }
  0x1b   :  { %199 = vmatpush.bf16.msrb.mxu1 %v178_v31  ;;  %v851_v63 = vor.u32 %v994_v61, %v848_v62  ;;  %v977_v1 = vld [vmem:[#allocation6 + $0x74] sm:$0xf0]  ;;  %v838_v2 = vld [vmem:[#allocation6 + $0xf0] sm:$0xf]  ;;  %v976_v5 = vld [vmem:[#allocation6 + $0x74] sm:$0xf] }
  0x1c   :  { %v775_v3 = vor.u32 %v977_v1, %v774_v0  ;;  %v993_v4 = vld [vmem:[#allocation6 + $0xf4] sm:$0xf0]  ;;  %v776_v6 = vld [vmem:[#allocation6 + $0x78] sm:$0xf0]  ;;  %v992_v9 = vld [vmem:[#allocation6 + $0xf4] sm:$0xf] }
  0x1d   :  { %436 = vmatpush.bf16.msrb.mxu2 %v791_v43  ;;  %449 = vmatpush.bf16.msrb.mxu3 %v855_v47  ;;  %v839_v7 = vor.u32 %v993_v4, %v838_v2  ;;  %v779_v8 = vor.u32 %v976_v5, %v776_v6  ;;  %v840_v10 = vld [vmem:[#allocation6 + $0xf8] sm:$0xf0]  ;;  %v766_v11 = vld [vmem:[#allocation6 + $0x60] sm:$0xf]  ;;  %v975_v13 = vld [vmem:[#allocation6 + $0x64] sm:$0xf0] }
  0x1e   :  { %463 = vmatpush.bf16.msra.mxu0 %v787_v60  ;;  %v843_v12 = vor.u32 %v992_v9, %v840_v10  ;;  %v830_v14 = vld [vmem:[#allocation6 + $0xe0] sm:$0xf]  ;;  %v991_v15 = vld [vmem:[#allocation6 + $0xe4] sm:$0xf0]  ;;  %v767_v16 = vor.u32 %v975_v13, %v766_v11  ;;  %v974_v18 = vld [vmem:[#allocation6 + $0x64] sm:$0xf] }
  0x1f   :  { %200 = vmatpush.bf16.msrb.mxu1 %v727_v38  ;;  %v831_v17 = vor.u32 %v991_v15, %v830_v14  ;;  %v768_v19 = vld [vmem:[#allocation6 + $0x68] sm:$0xf0]  ;;  %v990_v20 = vld [vmem:[#allocation6 + $0xe4] sm:$0xf]  ;;  %v758_v24 = vld [vmem:[#allocation6 + $0x50] sm:$0xf] }
  0x20   :  { %v771_v21 = vor.u32 %v974_v18, %v768_v19  ;;  %v832_v22 = vld [vmem:[#allocation6 + $0xe8] sm:$0xf0]  ;;  %v973_v25 = vld [vmem:[#allocation6 + $0x54] sm:$0xf0]  ;;  %v822_v26 = vld [vmem:[#allocation6 + $0xd0] sm:$0xf] }
  0x21   :  { %437 = vmatpush.bf16.msrb.mxu2 %v783_v55  ;;  %450 = vmatpush.bf16.msrb.mxu3 %v847_v59  ;;  %v835_v23 = vor.u32 %v990_v20, %v832_v22  ;;  %v759_v27 = vor.u32 %v973_v25, %v758_v24  ;;  %v989_v28 = vld [vmem:[#allocation6 + $0xd4] sm:$0xf0]  ;;  %v972_v29 = vld [vmem:[#allocation6 + $0x54] sm:$0xf]  ;;  %v760_v30 = vld [vmem:[#allocation6 + $0x58] sm:$0xf0] }
  0x22   :  { %464 = vmatpush.bf16.msra.mxu0 %v779_v8  ;;  %v823_v31 = vor.u32 %v989_v28, %v822_v26  ;;  %v763_v32 = vor.u32 %v972_v29, %v760_v30  ;;  %v988_v33 = vld [vmem:[#allocation6 + $0xd4] sm:$0xf]  ;;  %v824_v34 = vld [vmem:[#allocation6 + $0xd8] sm:$0xf0]  ;;  %v750_v36 = vld [vmem:[#allocation6 + $0x40] sm:$0xf] }
  0x23   :  { %474 = vmatpush.bf16.msra.mxu1 %v867_v39  ;;  %v971_v37 = vld [vmem:[#allocation6 + $0x44] sm:$0xf0]  ;;  %v814_v38 = vld [vmem:[#allocation6 + $0xc0] sm:$0xf]  ;;  %v970_v41 = vld [vmem:[#allocation6 + $0x44] sm:$0xf] }
  0x24   :  { %v751_v39 = vor.u32 %v971_v37, %v750_v36  ;;  %v987_v40 = vld [vmem:[#allocation6 + $0xc4] sm:$0xf0]  ;;  %v752_v42 = vld [vmem:[#allocation6 + $0x48] sm:$0xf0]  ;;  %v986_v45 = vld [vmem:[#allocation6 + $0xc4] sm:$0xf] }
  0x25   :  { %438 = vmatpush.bf16.msrb.mxu2 %v775_v3  ;;  %451 = vmatpush.bf16.msrb.mxu3 %v839_v7  ;;  %v815_v43 = vor.u32 %v987_v40, %v814_v38  ;;  %v755_v44 = vor.u32 %v970_v41, %v752_v42  ;;  %v816_v46 = vld [vmem:[#allocation6 + $0xc8] sm:$0xf0]  ;;  %v742_v48 = vld [vmem:[#allocation6 + $0x30] sm:$0xf]  ;;  %v969_v49 = vld [vmem:[#allocation6 + $0x34] sm:$0xf0] }
  0x26   :  { %465 = vmatpush.bf16.msra.mxu0 %v771_v21  ;;  %v819_v47 = vor.u32 %v986_v45, %v816_v46  ;;  %v806_v50 = vld [vmem:[#allocation6 + $0xb0] sm:$0xf]  ;;  %v985_v52 = vld [vmem:[#allocation6 + $0xb4] sm:$0xf0]  ;;  %v968_v53 = vld [vmem:[#allocation6 + $0x34] sm:$0xf] }
  0x27   :  { %475 = vmatpush.bf16.msra.mxu1 %v859_v51  ;;  %v743_v51 = vor.u32 %v969_v49, %v742_v48  ;;  %v744_v54 = vld [vmem:[#allocation6 + $0x38] sm:$0xf0]  ;;  %v807_v55 = vor.u32 %v985_v52, %v806_v50  ;;  %v984_v57 = vld [vmem:[#allocation6 + $0xb4] sm:$0xf]  ;;  %v898_v60 = vld [vmem:[#allocation6 + $0x1a0] sm:$0xf] }
  0x28   :  { %v747_v56 = vor.u32 %v968_v53, %v744_v54  ;;  %v808_v58 = vld [vmem:[#allocation6 + $0xb8] sm:$0xf0]  ;;  %v1007_v61 = vld [vmem:[#allocation6 + $0x1a4] sm:$0xf0]  ;;  %v930_v62 = vld [vmem:[#allocation6 + $0x220] sm:$0xf] }
  0x29   :  { %439 = vmatpush.bf16.msrb.mxu2 %v767_v16  ;;  %452 = vmatpush.bf16.msrb.mxu3 %v831_v17  ;;  %v811_v59 = vor.u32 %v984_v57, %v808_v58  ;;  %v1015_v0 = vld [vmem:[#allocation6 + $0x224] sm:$0xf0]  ;;  %v894_v1 = vld [vmem:[#allocation6 + $0x190] sm:$0xf]  ;;  %v1006_v2 = vld [vmem:[#allocation6 + $0x194] sm:$0xf0] }
  0x2a   :  { %737 = vmatmul.msk.bf16.vlgmr.msrb.gmra.mxu1 %vm166_vm4, %v147_v35  ;;  %v827_v35 = vor.u32 %v988_v33, %v824_v34  ;;  %466 = vmatpush.bf16.msra.mxu0 %v763_v32  ;;  %v1145_v4 = vld [vmem:[#allocation6 + $0x230] sm:$0x33]  ;;  %v931_v5 = vor.u32 %v1015_v0, %v930_v62  ;;  %v1014_v7 = vld [vmem:[#allocation6 + $0x214] sm:$0xf0]  ;;  %v895_v8 = vor.u32 %v1006_v2, %v894_v1  ;;  %v890_v10 = vld [vmem:[#allocation6 + $0x180] sm:$0xf] }
  0x2b   :  { %476 = vmatpush.bf16.msra.mxu1 %v851_v63  ;;  %v899_v63 = vor.u32 %v1007_v61, %v898_v60  ;;  %v926_v6 = vld [vmem:[#allocation6 + $0x210] sm:$0xf]  ;;  %v1005_v11 = vld [vmem:[#allocation6 + $0x184] sm:$0xf0]  ;;  %v250_v13 = vunpack.c.l.b16 %v1145_v4  ;;  %v251_v14 = vunpack.c.h.b16 %v1145_v4  ;;  %v922_v15 = vld [vmem:[#allocation6 + $0x200] sm:$0xf] }
  0x2c   :  { %v927_v9 = vor.u32 %v1014_v7, %v926_v6  ;;  %v1013_v16 = vld [vmem:[#allocation6 + $0x204] sm:$0xf0]  ;;  %v891_v18 = vor.u32 %v1005_v11, %v890_v10  ;;  %v1004_v45 = vld [vmem:[#allocation6 + $0x174] sm:$0xf0]  ;;  %v918_v46 = vld [vmem:[#allocation6 + $0x1f0] sm:$0xf] }
  0x2d   :  { %440 = vmatpush.bf16.msrb.mxu2 %v759_v27  ;;  %453 = vmatpush.bf16.msrb.mxu3 %v823_v31  ;;  %v923_v19 = vor.u32 %v1013_v16, %v922_v15  ;;  %v1149_v20 = vpack.c.b16 %v250_v13, %v250_v13  ;;  %v1151_v21 = vpack.c.b16 %v251_v14, %v251_v14  ;;  %v1012_v48 = vld [vmem:[#allocation6 + $0x1f4] sm:$0xf0]  ;;  %v882_v50 = vld [vmem:[#allocation6 + $0x160] sm:$0xf]  ;;  %v1011_v54 = vld [vmem:[#allocation6 + $0x1e4] sm:$0xf0] }
  0x2e   :  { %467 = vmatpush.bf16.msra.mxu0 %v755_v44  ;;  %v886_v44 = vld [vmem:[#allocation6 + $0x170] sm:$0xf]  ;;  %v919_v49 = vor.u32 %v1012_v48, %v918_v46  ;;  %v914_v52 = vld [vmem:[#allocation6 + $0x1e0] sm:$0xf]  ;;  %v1002_v57 = vld [vmem:[#allocation6 + $0x154] sm:$0xf0] }
  0x2f   :  { %477 = vmatpush.bf16.msra.mxu1 %v843_v12  ;;  %v255_v24 = vpack.i.b16 %v1149_v20, %v1149_v20  ;;  %v259_v25 = vpack.i.b16 %v1151_v21, %v1151_v21  ;;  %v1010_v60 = vld [vmem:[#allocation6 + $0x1d4] sm:$0xf0]  ;;  %v874_v62 = vld [vmem:[#allocation6 + $0x140] sm:$0xf]  ;;  %v1009_v2 = vld [vmem:[#allocation6 + $0x1c4] sm:$0xf0] }
  0x30   :  { %v906_v1 = vld [vmem:[#allocation6 + $0x1c0] sm:$0xf]  ;;  %v1000_v6 = vld [vmem:[#allocation6 + $0x134] sm:$0xf0]  ;;  %v902_v7 = vld [vmem:[#allocation6 + $0x1b0] sm:$0xf] }
  0x31   :  { %441 = vmatpush.bf16.msrb.mxu2 %v751_v39  ;;  %454 = vmatpush.bf16.msrb.mxu3 %v815_v43  ;;  %v257_v27 = vperm.slane %v255_v24, 0  ;;  %v261_v28 = vperm.slane %v259_v25, 0  ;;  %v962_v11 = vld [vmem:[#allocation6 + $0x1a4] sm:$0xf]  ;;  %v958_v13 = vld [vmem:[#allocation6 + $0x194] sm:$0xf] }
  0x32   :  { %468 = vmatpush.bf16.msra.mxu0 %v747_v56  ;;  %v878_v56 = vld [vmem:[#allocation6 + $0x150] sm:$0xf]  ;;  %v1022_v15 = vld [vmem:[#allocation6 + $0x198] sm:$0xf0]  ;;  %v488_v24 = vshrl.u32 %v1149_v20, 16  ;;  %v492_v25 = vshrl.u32 %v1151_v21, 16 }
  0x33   :  { %478 = vmatpush.bf16.msra.mxu1 %v835_v23  ;;  %v264_v33 = vunpack.c.l.bf16 %v257_v27  ;;  %v265_v34 = vunpack.c.l.bf16 %v261_v28  ;;  %v879_v58 = vor.u32 %v1002_v57, %v878_v56  ;;  %v959_v16 = vor.u32 %v1022_v15, %v958_v13  ;;  %v946_v27 = vld [vmem:[#allocation6 + $0x164] sm:$0xf]  ;;  %v1019_v28 = vld [vmem:[#allocation6 + $0x168] sm:$0xf0] }
  0x34   :  { %v938_v56 = vld [vmem:[#allocation6 + $0x144] sm:$0xf]  ;;  %v1017_v57 = vld [vmem:[#allocation6 + $0x148] sm:$0xf0] }
  0x35   :  { %442 = vmatpush.bf16.msrb.mxu2 %v743_v51  ;;  %455 = vmatpush.bf16.msrb.mxu3 %v807_v55  ;;  %v1003_v51 = vld [vmem:[#allocation6 + $0x164] sm:$0xf0]  ;;  %v915_v55 = vor.u32 %v1011_v54, %v914_v52  ;;  %v1018_v54 = vld [vmem:[#allocation6 + $0x158] sm:$0xf0] }
  0x36   :  { %v883_v53 = vor.u32 %v1003_v51, %v882_v50 }
  0x37   :  { %479 = vmatpush.bf16.msra.mxu1 %v827_v35 }
  0x39   :  { %605 = vmatpush.bf16.msra.mxu2 %v899_v63  ;;  %618 = vmatpush.bf16.msra.mxu3 %v931_v5  ;;  %v1001_v63 = vld [vmem:[#allocation6 + $0x144] sm:$0xf0]  ;;  %v870_v5 = vld [vmem:[#allocation6 + $0x130] sm:$0xf] }
  0x3a   :  { %v875_v0 = vor.u32 %v1001_v63, %v874_v62  ;;  %v633_v62 = vpack.i.b16 %v1145_v4, %v1145_v4 }
  0x3b   :  { %480 = vmatpush.bf16.msra.mxu1 %v819_v47  ;;  %v887_v47 = vor.u32 %v1004_v45, %v886_v44 }
  0x3c   :  { %v635_v63 = vperm.slane %v633_v62, 1 }
  0x3d   :  { %606 = vmatpush.bf16.msra.mxu2 %v895_v8  ;;  %619 = vmatpush.bf16.msra.mxu3 %v927_v9  ;;  %v871_v8 = vor.u32 %v1000_v6, %v870_v5  ;;  %v1008_v9 = vld [vmem:[#allocation6 + $0x1b4] sm:$0xf0] }
  0x3e   :  { %v903_v10 = vor.u32 %v1008_v9, %v902_v7  ;;  %v637_v5 = vunpack.c.l.bf16 %v635_v63 }
  0x3f   :  { %481 = vmatpush.bf16.msra.mxu1 %v811_v59  ;;  %v910_v59 = vld [vmem:[#allocation6 + $0x1d0] sm:$0xf] }
  0x40   :  { %v911_v61 = vor.u32 %v1010_v60, %v910_v59  ;;  %v934_v59 = vld [vmem:[#allocation6 + $0x134] sm:$0xf]  ;;  %v1016_v60 = vld [vmem:[#allocation6 + $0x138] sm:$0xf0] }
  0x41   :  { %607 = vmatpush.bf16.msra.mxu2 %v891_v18  ;;  %620 = vmatpush.bf16.msra.mxu3 %v923_v19  ;;  %v1021_v18 = vld [vmem:[#allocation6 + $0x188] sm:$0xf0] }
  0x45   :  { %608 = vmatpush.bf16.msra.mxu2 %v887_v47  ;;  %621 = vmatpush.bf16.msra.mxu3 %v919_v49 }
  0x49   :  { %609 = vmatpush.bf16.msra.mxu2 %v883_v53  ;;  %622 = vmatpush.bf16.msra.mxu3 %v915_v55  ;;  %v942_v53 = vld [vmem:[#allocation6 + $0x154] sm:$0xf] }
  0x4a   :  { %v943_v55 = vor.u32 %v1018_v54, %v942_v53 }
  0x4d   :  { %610 = vmatpush.bf16.msra.mxu2 %v879_v58  ;;  %623 = vmatpush.bf16.msra.mxu3 %v911_v61  ;;  %v939_v58 = vor.u32 %v1017_v57, %v938_v56  ;;  %v935_v61 = vor.u32 %v1016_v60, %v934_v59 }
  0x51   :  { %611 = vmatpush.bf16.msra.mxu2 %v875_v0 }
  0x55   :  { %612 = vmatpush.bf16.msra.mxu2 %v871_v8 }
  0x97   :  { %v189_v3 = vpop.f32.mrf.mxu1 }
  0x9b   :  { %v231_v12 = vpop.f32.mrf.mxu2  ;;  %v244_v17 = vpop.f32.mrf.mxu3 }
  0x9c   :  { %v232_v30 = vadd.f32 %v231_v12, %v189_v3  ;;  %v907_v3 = vor.u32 %v1009_v2, %v906_v1  ;;  %v1023_v12 = vld [vmem:[#allocation6 + $0x1a8] sm:$0xf0] }
  0x9d   :  { %v963_v14 = vor.u32 %v1023_v12, %v962_v11  ;;  %v705_v12 = vshrl.u32 %v1145_v4, 16 }
  0x9e   :  { %624 = vmatpush.bf16.msra.mxu3 %v907_v3 }
  0x9f   :  { %v191_v22 = vpop.f32.mrf.mxu1  ;;  %691 = vmatpush.bf16.msrb.mxu0 %v963_v14  ;;  %v706_v13 = vpack.i.b16 %v705_v12, %v705_v12 }
  0xa0   :  { %v950_v22 = vld [vmem:[#allocation6 + $0x174] sm:$0xf] }
  0xa1   :  { %v708_v14 = vperm.slane %v706_v13, 1 }
  0xa2   :  { %625 = vmatpush.bf16.msra.mxu3 %v903_v10 }
  0xa3   :  { %v233_v23 = vpop.f32.mrf.mxu2  ;;  %v246_v26 = vpop.f32.mrf.mxu3  ;;  %692 = vmatpush.bf16.msrb.mxu0 %v959_v16 }
  0xa4   :  { %v1020_v23 = vld [vmem:[#allocation6 + $0x178] sm:$0xf0] }
  0xa5   :  { %v951_v26 = vor.u32 %v1020_v23, %v950_v22 }
  0xa7   :  { %v202_v29 = vpop.f32.mrf.mxu1 }
  0xa8   :  { %v245_v31 = vadd.f32 %v244_v17, %v202_v29  ;;  %v954_v17 = vld [vmem:[#allocation6 + $0x184] sm:$0xf] }
  0xa9   :  { %v955_v19 = vor.u32 %v1021_v18, %v954_v17  ;;  %v710_v17 = vunpack.c.l.bf16 %v708_v14 }
  0xaa   :  { %v248_v32 = vpack.c.bf16 %v245_v31, %v232_v30  ;;  %v489_v31 = vpack.i.b16 %v488_v24, %v488_v24 }
  0xab   :  { %693 = vmatpush.bf16.msrb.mxu0 %v955_v19 }
  0xac   :  { %v262_v35 = vunpack.c.l.bf16 %v248_v32  ;;  %v263_v36 = vunpack.c.h.bf16 %v248_v32  ;;  %v493_v32 = vpack.i.b16 %v492_v25, %v492_v25 }
  0xae   :  { %v266_v37 = vadd.f32 %v264_v33, %v262_v35  ;;  %v267_v38 = vadd.f32 %v265_v34, %v263_v36  ;;  %v947_v33 = vor.u32 %v1019_v28, %v946_v27  ;;  %v491_v34 = vperm.slane %v489_v31, 0 }
  0xaf   :  { %v204_v39 = vpop.f32.mrf.mxu1  ;;  %694 = vmatpush.bf16.msrb.mxu0 %v951_v26  ;;  %v495_v35 = vperm.slane %v493_v32, 0 }
  0xb0   :  { %v271_v40 = vmax.f32 %v266_v37, 0.0  ;;  %v272_v41 = vmax.f32 %v267_v38, 0.0 }
  0xb1   :  { %v499_v21 = vunpack.c.l.bf16 %v495_v35 }
  0xb2   :  { %v273_v42 = vpack.c.bf16 %v271_v40, %v271_v40  ;;  %v274_v43 = vpack.c.bf16 %v272_v41, %v272_v41  ;;  %v498_v40 = vunpack.c.l.bf16 %v491_v34 }
  0xb3   :  { %695 = vmatpush.bf16.msrb.mxu0 %v947_v33 }
  0xb4   :  { %443 = vmatmul.bf16.vlgmr.msrb.gmra.mxu2 %v273_v42  ;;  %456 = vmatmul.bf16.vlgmr.msrb.gmra.mxu3 %v274_v43 }
  0xb5   :  { %469 = vmatmul.bf16.vlgmr.msra.gmra.mxu0 %v273_v42  ;;  %482 = vmatmul.bf16.vlgmr.msra.gmra.mxu1 %v274_v43 }
  0xb7   :  { %696 = vmatpush.bf16.msrb.mxu0 %v943_v55 }
  0xbb   :  { %697 = vmatpush.bf16.msrb.mxu0 %v939_v58 }
  0xbf   :  { %698 = vmatpush.bf16.msrb.mxu0 %v935_v61 }
 0x132   :  { %v470_v29 = vpop.f32.mrf.mxu0  ;;  %v483_v30 = vpop.f32.mrf.mxu1 }
 0x133   :  { %v484_v38 = vadd.f32 %v483_v30, %v470_v29 }
 0x137   :  { %v444_v36 = vpop.f32.mrf.mxu2  ;;  %v457_v37 = vpop.f32.mrf.mxu3 }
 0x138   :  { %v458_v39 = vadd.f32 %v457_v37, %v444_v36 }
 0x13a   :  { %v487_v20 = vpack.c.bf16 %v484_v38, %v458_v39  ;;  %v472_v41 = vpop.f32.mrf.mxu0  ;;  %v485_v42 = vpop.f32.mrf.mxu1 }
 0x13c   :  { %v496_v43 = vunpack.c.l.bf16 %v487_v20  ;;  %v497_v44 = vunpack.c.h.bf16 %v487_v20 }
 0x13e   :  { %v500_v45 = vadd.f32 %v498_v40, %v496_v43  ;;  %v501_v46 = vadd.f32 %v499_v21, %v497_v44 }
 0x13f   :  { %v446_v47 = vpop.f32.mrf.mxu2  ;;  %v459_v48 = vpop.f32.mrf.mxu3 }
 0x140   :  { %v505_v49 = vmax.f32 %v500_v45, 0.0  ;;  %v506_v50 = vmax.f32 %v501_v46, 0.0 }
 0x142   :  { %v507_v51 = vpack.c.bf16 %v505_v49, %v505_v49  ;;  %v508_v52 = vpack.c.bf16 %v506_v50, %v506_v50 }
 0x144   :  { %613 = vmatmul.bf16.vlgmr.msra.gmra.mxu2 %v507_v51  ;;  %626 = vmatmul.bf16.vlgmr.msra.gmra.mxu3 %v508_v52 }
 0x1c7   :  { %v614_v0 = vpop.f32.mrf.mxu2  ;;  %v627_v1 = vpop.f32.mrf.mxu3 }
 0x1c8   :  { %v628_v2 = vadd.f32 %v627_v1, %v614_v0 }
 0x1ca   :  { %v631_v3 = vpack.c.bf16 %v628_v2, %v628_v2 }
 0x1cc   :  { %v636_v6 = vunpack.c.l.bf16 %v631_v3 }
 0x1ce   :  { %v638_v7 = vadd.f32 %v637_v5, %v636_v6 }
 0x1cf   :  { %v616_v8 = vpop.f32.mrf.mxu2  ;;  %v629_v9 = vpop.f32.mrf.mxu3 }
 0x1d0   :  { %v641_v10 = vmax.f32 %v638_v7, 0.0 }
 0x1d2   :  { %v642_v11 = vpack.c.bf16 %v641_v10, %v641_v10 }
 0x1d4   :  { %699 = vmatmul.bf16.vlgmr.msrb.gmra.mxu0 %v642_v11 }
 0x251   :  { %v700_v15 = vpop.f32.mrf.mxu0 }
 0x252   :  { %v704_v16 = vpack.c.bf16 %v700_v15, %v700_v15 }
 0x254   :  { %v709_v18 = vunpack.c.l.bf16 %v704_v16 }
 0x256   :  { %v711_v19 = vadd.f32 %v710_v17, %v709_v18 }
 0x258   :  { %v712_v22 = vpack.c.bf16 %v711_v19, %v711_v19 }
 0x259   :  { %v702_v23 = vpop.f32.mrf.mxu0 }
 0x25a   :  { %713 = vst [vmem:[%s1168_s3] sm:$0xf] %v712_v22 }
 0x25b   :  { %718 = vsyncpa [#allocation3], 1 }
 0x25c   :  { %719 = vsyncpa [#allocation5], 1 }

</bundles_post_ra>
